<compile_context>
chip_gen: v5e
topology: v5e:2x2
jax: 0.10.0
libtpu: 0.0.40
codegen_flags: <defaults>
</compile_context>

<pallas_src>
import functools

import jax
import jax.numpy as jnp
from jax import lax
from jax.experimental import pallas as pl
from jax.experimental.pallas import tpu as pltpu


def _conv1d_kernel(xl_ref, x_ref, xr_ref, w_ref, b_ref, o_ref, slab_ref, *,
                   kernel_size, dilation, pad_left, tl, hb, length, block_b,
                   c_in, cmp_dtype, mask_main):
    """One (batch-tile, L-tile) grid step.

    xl_ref:   (bb, C_in, hb)   left-neighbour 128-aligned halo block
    x_ref:    (bb, C_in, tl)   main input tile, positions [l*tl, l*tl + tl)
    xr_ref:   (bb, C_in, hb)   right-neighbour halo block
    w_ref:    (C_out, K*C_in)  resident weight, w[o, k*C_in + c] = W[o, c, k]
    b_ref:    (C_out, 1)       resident bias (f32)
    o_ref:    (bb, C_out, tl)  output tile
    slab_ref: (K*C_in, tl)     im2col scratch (compute dtype)
    """
    l = pl.program_id(1)

    # Main tile.  Zero everything at/after position `length` (right-edge conv
    # zero-padding + the unspecified tail of the clamped edge-block DMA).
    main = x_ref[...]
    if mask_main:
        pos = l * tl + lax.broadcasted_iota(jnp.int32, (1, 1, tl), 2)
        main = jnp.where(pos < length, main, 0)
    main = main.astype(cmp_dtype)

    halo_right = dilation * (kernel_size - 1) - pad_left
    left = right = None
    if pad_left > 0:
        # Positions [l*tl - hb, l*tl); for the first tile all of them lie in
        # the conv's left zero padding.
        left = jnp.where(l == 0, 0, xl_ref[...]).astype(cmp_dtype)
    if halo_right > 0:
        # Positions [(l+1)*tl, (l+1)*tl + hb); zero everything >= length
        # (covers both the padded region and any clamped/garbage lanes).
        pos_r = (l + 1) * tl + lax.broadcasted_iota(jnp.int32, (1, 1, hb), 2)
        right = jnp.where(pos_r < length, xr_ref[...], 0).astype(cmp_dtype)

    w = w_ref[...]
    b = b_ref[...]
    for i in range(block_b):
        # Build the im2col slab once (single copy, no concatenates):
        # slab[k*C_in + c, j] = x_padded[c, l*tl + j + k*dilation - pad_left].
        for k in range(kernel_size):
            s = k * dilation - pad_left
            r0, r1 = k * c_in, (k + 1) * c_in
            if s < 0:
                n = -s
                slab_ref[r0:r1, 0:n] = left[i, :, hb - n:hb]
                slab_ref[r0:r1, n:tl] = main[i, :, 0:tl - n]
            elif s == 0:
                slab_ref[r0:r1, :] = main[i]
            else:
                slab_ref[r0:r1, 0:tl - s] = main[i, :, s:tl]
                slab_ref[r0:r1, tl - s:tl] = right[i, :, 0:s]
        # One deep MXU contraction over K*C_in with an f32 accumulator.
        acc = jnp.dot(w, slab_ref[...], preferred_element_type=jnp.float32)
        o_ref[i] = (acc + b).astype(o_ref.dtype)


def _vmem_budget_bytes():
    """Scoped-VMEM budget from the actual chip (64 MiB v7x, 128 MiB v5e/v6e)."""
    cap = 64 * 1024 * 1024
    try:
        info = pltpu.get_tpu_info()
        cap = int(getattr(info, "vmem_capacity_bytes", cap) or cap)
    except Exception:
        pass
    return int(min(cap * 3 // 4, 100 * 1024 * 1024))


def _auto_tiles(B, C_in, C_out, K, L_out, hb, x_item, cmp_item, out_item,
                vmem_budget, tile_l, block_b):
    """Pick (batch rows per step, L tile) so each grid step moves ~1 MiB of
    input and double-buffered tiles stay inside the per-generation VMEM budget."""
    tl_full = hb * pl.cdiv(L_out, hb)
    target = 1 << 20                      # ~1 MiB of main-tile input per step

    if block_b is None:
        want = max(1, target // max(1, C_in * tl_full * x_item))
        want = min(want, 8, B)
    else:
        want = max(1, min(block_b, B))
    bb = max(d for d in range(1, want + 1) if B % d == 0)

    tl = tile_l if tile_l is not None else target // max(1, bb * C_in * x_item)
    tl = hb * max(1, tl // hb)
    tl = min(tl, tl_full)

    # VMEM ceiling: double-buffered main in / out, halos, resident weight, slab.
    per_lane = (2 * bb * C_in * x_item + 2 * bb * C_out * out_item
                + K * C_in * cmp_item)
    fixed = (4 * bb * C_in * hb * x_item + 2 * C_out * K * C_in * cmp_item
             + (2 << 20))
    if vmem_budget > fixed:
        tl_vmem = hb * max(1, (vmem_budget - fixed) // per_lane // hb)
        tl = min(tl, tl_vmem)
    tl = max(tl, hb)

    n_b = B // bb
    n_l = pl.cdiv(L_out, tl)
    # Keep >=2 grid steps when possible so v7x's two TensorCores both get work.
    if tile_l is None and n_b * n_l < 2 and L_out > hb:
        tl = hb * pl.cdiv(pl.cdiv(L_out, hb), 2)
        n_l = pl.cdiv(L_out, tl)
    return bb, tl, n_b, n_l


def conv1d_pallas(x, weight, bias, *, dilation=1, tile_l=None, block_b=None,
                  compute_dtype=jnp.bfloat16):
    """Dilated 'same' Conv1d matching nn.Conv1d(padding=dilation*(K-1)//2).

    x:      (B, C_in, L)
    weight: (C_out, C_in, K)   (already weight-normalized)
    bias:   (C_out,)
    compute_dtype: dtype of the MXU matmul inputs (default bfloat16 on all TPU
                   generations; accumulation + bias stay f32).  Use
                   jnp.float32 for exact math.
    returns (B, C_out, L_out), L_out = L + 2*pad - dilation*(K-1), dtype x.dtype.
    """
    B, C_in, L = x.shape
    C_out, C_in_w, K = weight.shape
    assert C_in_w == C_in, (C_in_w, C_in)

    halo = dilation * (K - 1)
    pad_left = halo // 2
    L_out = L + 2 * pad_left - halo
    assert L_out >= 1, "sequence shorter than the receptive field"
    hb = 128 * pl.cdiv(max(halo, 1), 128)     # lane-aligned halo block width

    cmp_dtype = (jnp.dtype(compute_dtype) if compute_dtype is not None
                 else jnp.dtype(x.dtype))
    x_item = jnp.dtype(x.dtype).itemsize
    out_dtype = x.dtype
    out_item = jnp.dtype(out_dtype).itemsize

    vmem_budget = _vmem_budget_bytes()
    bb, tl, n_b, n_l = _auto_tiles(B, C_in, C_out, K, L_out, hb, x_item,
                                   cmp_dtype.itemsize, out_item, vmem_budget,
                                   tile_l, block_b)
    hbpt = tl // hb                       # 128-wide halo blocks per L tile
    last_hb = max(0, (L - 1) // hb)       # last in-bounds 128-block of x

    # Lane-dense weight layout: w2[o, k*C_in + c] = weight[o, c, k].
    w2 = weight.transpose(0, 2, 1).reshape(C_out, K * C_in).astype(cmp_dtype)
    b2 = bias.reshape(C_out, 1).astype(jnp.float32)

    kernel = functools.partial(
        _conv1d_kernel, kernel_size=K, dilation=dilation, pad_left=pad_left,
        tl=tl, hb=hb, length=L, block_b=bb, c_in=C_in, cmp_dtype=cmp_dtype,
        mask_main=(n_l * tl > L))

    cost = pl.CostEstimate(
        flops=2 * B * C_out * C_in * K * L_out,
        transcendentals=0,
        bytes_accessed=int(B * C_in * L * x_item                 # input (once)
                           + 2 * B * n_l * C_in * hb * x_item    # halo re-reads
                           + C_out * K * C_in * cmp_dtype.itemsize
                           + C_out * 4
                           + B * C_out * L_out * out_item),
    )

    out = pl.pallas_call(
        kernel,
        out_shape=jax.ShapeDtypeStruct((B, C_out, L_out), out_dtype),
        grid_spec=pltpu.PrefetchScalarGridSpec(
            num_scalar_prefetch=0,
            grid=(n_b, n_l),
            in_specs=[
                # Left halo: previous 128-wide block (clamped at the left edge;
                # zeroed in-kernel for the first tile).
                pl.BlockSpec((bb, C_in, hb),
                             lambda b, l: (b, 0, jnp.maximum(l * hbpt - 1, 0))),
                # Main lane-dense input tile.
                pl.BlockSpec((bb, C_in, tl), lambda b, l: (b, 0, l)),
                # Right halo: next 128-wide block (clamped to the last
                # in-bounds block; positions >= L are zeroed in-kernel).
                pl.BlockSpec((bb, C_in, hb),
                             lambda b, l: (b, 0,
                                           jnp.minimum((l + 1) * hbpt,
                                                       last_hb))),
                # Weight and bias stay resident (constant block index).
                pl.BlockSpec((C_out, K * C_in), lambda b, l: (0, 0)),
                pl.BlockSpec((C_out, 1), lambda b, l: (0, 0)),
            ],
            out_specs=pl.BlockSpec((bb, C_out, tl), lambda b, l: (b, 0, l)),
            scratch_shapes=[pltpu.VMEM((K * C_in, tl), cmp_dtype)],
        ),
        compiler_params=pltpu.CompilerParams(
            dimension_semantics=("parallel", "parallel"),
            vmem_limit_bytes=int(vmem_budget),
        ),
        cost_estimate=cost,
    )(x, x, x, w2, b2)
    return out


def make_params(key, in_channels, out_channels, kernel_size):
    """Deterministic synthetic parameters mimicking weight_norm(Conv1d) +
    Kaiming-normal init (parameter-time glue, not kernel work)."""
    kv, kg, kb = jax.random.split(key, 3)
    fan_in = in_channels * kernel_size
    v = jax.random.normal(kv, (out_channels, in_channels, kernel_size),
                          jnp.float32) * jnp.sqrt(2.0 / fan_in)
    g = 1.0 + 0.1 * jax.random.normal(kg, (out_channels,), jnp.float32)
    norm = jnp.sqrt(jnp.sum(v * v, axis=(1, 2), keepdims=True))
    w = g[:, None, None] * v / norm
    bound = 1.0 / jnp.sqrt(fan_in)
    b = jax.random.uniform(kb, (out_channels,), jnp.float32,
                           minval=-bound, maxval=bound)
    return w, b


def conv1d_reference(x, weight, bias, *, dilation):
    """Pure-JAX reference (lax conv) for correctness checking."""
    K = weight.shape[-1]
    pad = dilation * (K - 1) // 2
    out = lax.conv_general_dilated(
        x, weight,
        window_strides=(1,),
        padding=[(pad, pad)],
        rhs_dilation=(dilation,),
        dimension_numbers=("NCH", "OIH", "NCH"),
    )
    return out + bias[None, :, None]


if __name__ == "__main__":
    # Shapes consistent with Conv(in_channels=4, out_channels=8,
    # kernel_size=3, dilation=2) applied to an NCL input.
    B, C_in, C_out, L, K, dilation = 2, 4, 8, 16, 3, 2

    key = jax.random.PRNGKey(0)
    kx, kp = jax.random.split(key)
    x = jax.random.normal(kx, (B, C_in, L), jnp.float32)
    w, b = make_params(kp, C_in, C_out, K)
    ref = conv1d_reference(x, w, b, dilation=dilation)

    # Exact-math path (f32 matmul inputs).
    out_f32 = jax.block_until_ready(
        conv1d_pallas(x, w, b, dilation=dilation, compute_dtype=jnp.float32))
    assert out_f32.shape == ref.shape, (out_f32.shape, ref.shape)
    assert jnp.allclose(out_f32, ref, atol=1e-4, rtol=1e-4), "f32 mismatch"

    # Default path: bf16 matmul inputs, f32 accumulation.
    out_bf16 = jax.block_until_ready(conv1d_pallas(x, w, b, dilation=dilation))
    assert out_bf16.shape == ref.shape
    assert jnp.allclose(out_bf16, ref, atol=1e-1, rtol=1e-1), "bf16 mismatch"

    # Longer, non-128-multiple sequence: multiple L tiles, cross-tile halos
    # with dilation, ragged tail handled by partial blocks + in-kernel masks.
    L2 = 1300
    x2 = jax.random.normal(kx, (B, C_in, L2), jnp.float32)
    ref2 = conv1d_reference(x2, w, b, dilation=dilation)
    out2 = jax.block_until_ready(
        conv1d_pallas(x2, w, b, dilation=dilation, tile_l=256,
                      compute_dtype=jnp.float32))
    assert out2.shape == ref2.shape, (out2.shape, ref2.shape)
    assert jnp.allclose(out2, ref2, atol=1e-4, rtol=1e-4), "tiled-L mismatch"

    # Auto-tiled default (bf16) on the long sequence, dilation=1.
    ref3 = conv1d_reference(x2, w, b, dilation=1)
    out3 = jax.block_until_ready(conv1d_pallas(x2, w, b, dilation=1))
    assert out3.shape == ref3.shape, (out3.shape, ref3.shape)
    assert jnp.allclose(out3, ref3, atol=1e-1, rtol=1e-1), "auto-tile mismatch"

    print("KERNEL_OK")
</pallas_src>

<mosaic_0001>
module attributes {stable_mosaic.version = 11 : i64} {
  func.func @_conv1d_kernel(%arg0: i32, %arg1: i32, %arg2: memref<2x4x128xf32, #tpu.memory_space<vmem>>, %arg3: memref<2x4x128xf32, #tpu.memory_space<vmem>>, %arg4: memref<2x4x128xf32, #tpu.memory_space<vmem>>, %arg5: memref<8x12xf32, #tpu.memory_space<vmem>>, %arg6: memref<8x1xf32, #tpu.memory_space<vmem>>, %arg7: memref<2x8x128xf32, #tpu.memory_space<vmem>>, %arg8: memref<12x128xf32, #tpu.memory_space<vmem>>) attributes {dimension_semantics = [#tpu.dimension_semantics<parallel>, #tpu.dimension_semantics<parallel>], iteration_bounds = array<i64: 1, 1>, scalar_prefetch = 0 : i64, scratch_operands = 1 : i64, tpu.core_type = #tpu.core_type<tc>, window_params = [{transform_indices = @transform_0, window_bounds = array<i64: 2, 4, 128>}, {transform_indices = @transform_1, window_bounds = array<i64: 2, 4, 128>}, {transform_indices = @transform_2, window_bounds = array<i64: 2, 4, 128>}, {pipeline_mode = #tpu.pipeline_mode<synchronous>, transform_indices = @transform_3, window_bounds = array<i64: 8, 12>}, {pipeline_mode = #tpu.pipeline_mode<synchronous>, transform_indices = @transform_4, window_bounds = array<i64: 8, 1>}, {transform_indices = @transform_5, window_bounds = array<i64: 2, 8, 128>}]} {
    %c0 = arith.constant 0 : index
    %c0_0 = arith.constant 0 : index
    %c0_1 = arith.constant 0 : index
    %0 = vector.load %arg3[%c0, %c0_0, %c0_1] : memref<2x4x128xf32, #tpu.memory_space<vmem>>, vector<2x4x128xf32>
    %c128_i32 = arith.constant 128 : i32
    %1 = arith.muli %arg1, %c128_i32 : i32
    %2 = tpu.iota {dimensions = array<i32: 2>} : vector<1x1x128xi32>
    %3 = vector.broadcast %1 : i32 to vector<1x1x128xi32>
    %4 = arith.addi %3, %2 : vector<1x1x128xi32>
    %c16_i32 = arith.constant 16 : i32
    %5 = vector.broadcast %c16_i32 : i32 to vector<1x1x128xi32>
    %6 = arith.cmpi slt, %4, %5 : vector<1x1x128xi32>
    %c0_i32 = arith.constant 0 : i32
    %7 = arith.sitofp %c0_i32 : i32 to f32
    %8 = vector.shape_cast %6 : vector<1x1x128xi1> to vector<1x1x128xi1>
    %9 = vector.broadcast %8 : vector<1x1x128xi1> to vector<2x4x128xi1>
    %10 = vector.broadcast %7 : f32 to vector<2x4x128xf32>
    %11 = arith.select %9, %0, %10 : vector<2x4x128xi1>, vector<2x4x128xf32>
    %c0_i32_2 = arith.constant 0 : i32
    %12 = arith.cmpi eq, %arg1, %c0_i32_2 : i32
    %c0_3 = arith.constant 0 : index
    %c0_4 = arith.constant 0 : index
    %c0_5 = arith.constant 0 : index
    %13 = vector.load %arg2[%c0_3, %c0_4, %c0_5] : memref<2x4x128xf32, #tpu.memory_space<vmem>>, vector<2x4x128xf32>
    %c0_i32_6 = arith.constant 0 : i32
    %14 = arith.sitofp %c0_i32_6 : i32 to f32
    %15 = vector.broadcast %14 : f32 to vector<2x4x128xf32>
    %16 = arith.select %12, %15, %13 : vector<2x4x128xf32>
    %c1_i32 = arith.constant 1 : i32
    %17 = arith.addi %arg1, %c1_i32 : i32
    %c128_i32_7 = arith.constant 128 : i32
    %18 = arith.muli %17, %c128_i32_7 : i32
    %19 = tpu.iota {dimensions = array<i32: 2>} : vector<1x1x128xi32>
    %20 = vector.broadcast %18 : i32 to vector<1x1x128xi32>
    %21 = arith.addi %20, %19 : vector<1x1x128xi32>
    %c16_i32_8 = arith.constant 16 : i32
    %22 = vector.broadcast %c16_i32_8 : i32 to vector<1x1x128xi32>
    %23 = arith.cmpi slt, %21, %22 : vector<1x1x128xi32>
    %c0_9 = arith.constant 0 : index
    %c0_10 = arith.constant 0 : index
    %c0_11 = arith.constant 0 : index
    %24 = vector.load %arg4[%c0_9, %c0_10, %c0_11] : memref<2x4x128xf32, #tpu.memory_space<vmem>>, vector<2x4x128xf32>
    %c0_i32_12 = arith.constant 0 : i32
    %25 = arith.sitofp %c0_i32_12 : i32 to f32
    %26 = vector.shape_cast %23 : vector<1x1x128xi1> to vector<1x1x128xi1>
    %27 = vector.broadcast %26 : vector<1x1x128xi1> to vector<2x4x128xi1>
    %28 = vector.broadcast %25 : f32 to vector<2x4x128xf32>
    %29 = arith.select %27, %24, %28 : vector<2x4x128xi1>, vector<2x4x128xf32>
    %c0_13 = arith.constant 0 : index
    %c0_14 = arith.constant 0 : index
    %30 = vector.load %arg5[%c0_13, %c0_14] : memref<8x12xf32, #tpu.memory_space<vmem>>, vector<8x12xf32>
    %c0_15 = arith.constant 0 : index
    %c0_16 = arith.constant 0 : index
    %31 = vector.load %arg6[%c0_15, %c0_16] : memref<8x1xf32, #tpu.memory_space<vmem>>, vector<8x1xf32>
    %32 = vector.extract_strided_slice %16 {offsets = [0, 0, 126], sizes = [1, 4, 2], strides = [1, 1, 1]} : vector<2x4x128xf32> to vector<1x4x2xf32>
    %33 = vector.shape_cast %32 : vector<1x4x2xf32> to vector<4x2xf32>
    %c0_17 = arith.constant 0 : index
    %c0_18 = arith.constant 0 : index
    %34 = vector.load %arg8[%c0_17, %c0_18] : memref<12x128xf32, #tpu.memory_space<vmem>>, vector<4x2xf32>
    tpu.vector_store %arg8[%c0_17, %c0_18], %33 {strides = array<i32>} : memref<12x128xf32, #tpu.memory_space<vmem>>, vector<4x2xf32>,
    %35 = vector.extract_strided_slice %11 {offsets = [0, 0, 0], sizes = [1, 4, 126], strides = [1, 1, 1]} : vector<2x4x128xf32> to vector<1x4x126xf32>
    %36 = vector.shape_cast %35 : vector<1x4x126xf32> to vector<4x126xf32>
    %c0_19 = arith.constant 0 : index
    %c2 = arith.constant 2 : index
    %37 = vector.load %arg8[%c0_19, %c2] : memref<12x128xf32, #tpu.memory_space<vmem>>, vector<4x126xf32>
    tpu.vector_store %arg8[%c0_19, %c2], %36 {strides = array<i32>} : memref<12x128xf32, #tpu.memory_space<vmem>>, vector<4x126xf32>,
    %38 = vector.extract_strided_slice %11 {offsets = [0, 0, 0], sizes = [1, 4, 128], strides = [1, 1, 1]} : vector<2x4x128xf32> to vector<1x4x128xf32>
    %39 = vector.shape_cast %38 : vector<1x4x128xf32> to vector<4x128xf32>
    %c4 = arith.constant 4 : index
    %c0_20 = arith.constant 0 : index
    %40 = vector.load %arg8[%c4, %c0_20] : memref<12x128xf32, #tpu.memory_space<vmem>>, vector<4x128xf32>
    tpu.vector_store %arg8[%c4, %c0_20], %39 {strides = array<i32>} : memref<12x128xf32, #tpu.memory_space<vmem>>, vector<4x128xf32>,
    %41 = vector.extract_strided_slice %11 {offsets = [0, 0, 2], sizes = [1, 4, 126], strides = [1, 1, 1]} : vector<2x4x128xf32> to vector<1x4x126xf32>
    %42 = vector.shape_cast %41 : vector<1x4x126xf32> to vector<4x126xf32>
    %c8 = arith.constant 8 : index
    %c0_21 = arith.constant 0 : index
    %43 = vector.load %arg8[%c8, %c0_21] : memref<12x128xf32, #tpu.memory_space<vmem>>, vector<4x126xf32>
    tpu.vector_store %arg8[%c8, %c0_21], %42 {strides = array<i32>} : memref<12x128xf32, #tpu.memory_space<vmem>>, vector<4x126xf32>,
    %44 = vector.extract_strided_slice %29 {offsets = [0, 0, 0], sizes = [1, 4, 2], strides = [1, 1, 1]} : vector<2x4x128xf32> to vector<1x4x2xf32>
    %45 = vector.shape_cast %44 : vector<1x4x2xf32> to vector<4x2xf32>
    %c8_22 = arith.constant 8 : index
    %c126 = arith.constant 126 : index
    %46 = vector.load %arg8[%c8_22, %c126] : memref<12x128xf32, #tpu.memory_space<vmem>>, vector<4x2xf32>
    tpu.vector_store %arg8[%c8_22, %c126], %45 {strides = array<i32>} : memref<12x128xf32, #tpu.memory_space<vmem>>, vector<4x2xf32>,
    %c0_23 = arith.constant 0 : index
    %c0_24 = arith.constant 0 : index
    %47 = vector.load %arg8[%c0_23, %c0_24] : memref<12x128xf32, #tpu.memory_space<vmem>>, vector<12x128xf32>
    %cst = arith.constant dense<0.000000e+00> : vector<8x128xf32>
    %48 = tpu.matmul %30, %47, %cst {dimension_numbers = #tpu.dot_dimension_numbers<[1], [0], [0], [1], [0, 0, 1, 1], [], []>} : vector<8x12xf32>, vector<12x128xf32>, vector<8x128xf32> -> vector<8x128xf32>
    %49 = vector.broadcast %31 : vector<8x1xf32> to vector<8x128xf32>
    %50 = arith.addf %48, %49 : vector<8x128xf32>
    %c0_25 = arith.constant 0 : index
    %c0_26 = arith.constant 0 : index
    %c0_27 = arith.constant 0 : index
    %51 = vector.load %arg7[%c0_25, %c0_26, %c0_27] : memref<2x8x128xf32, #tpu.memory_space<vmem>>, vector<1x8x128xf32>
    %52 = vector.shape_cast %51 : vector<1x8x128xf32> to vector<8x128xf32>
    %53 = vector.shape_cast %50 : vector<8x128xf32> to vector<1x8x128xf32>
    tpu.vector_store %arg7[%c0_25, %c0_26, %c0_27], %53 {strides = array<i32>} : memref<2x8x128xf32, #tpu.memory_space<vmem>>, vector<1x8x128xf32>,
    %54 = vector.extract_strided_slice %16 {offsets = [1, 0, 126], sizes = [1, 4, 2], strides = [1, 1, 1]} : vector<2x4x128xf32> to vector<1x4x2xf32>
    %55 = vector.shape_cast %54 : vector<1x4x2xf32> to vector<4x2xf32>
    %c0_28 = arith.constant 0 : index
    %c0_29 = arith.constant 0 : index
    %56 = vector.load %arg8[%c0_28, %c0_29] : memref<12x128xf32, #tpu.memory_space<vmem>>, vector<4x2xf32>
    tpu.vector_store %arg8[%c0_28, %c0_29], %55 {strides = array<i32>} : memref<12x128xf32, #tpu.memory_space<vmem>>, vector<4x2xf32>,
    %57 = vector.extract_strided_slice %11 {offsets = [1, 0, 0], sizes = [1, 4, 126], strides = [1, 1, 1]} : vector<2x4x128xf32> to vector<1x4x126xf32>
    %58 = vector.shape_cast %57 : vector<1x4x126xf32> to vector<4x126xf32>
    %c0_30 = arith.constant 0 : index
    %c2_31 = arith.constant 2 : index
    %59 = vector.load %arg8[%c0_30, %c2_31] : memref<12x128xf32, #tpu.memory_space<vmem>>, vector<4x126xf32>
    tpu.vector_store %arg8[%c0_30, %c2_31], %58 {strides = array<i32>} : memref<12x128xf32, #tpu.memory_space<vmem>>, vector<4x126xf32>,
    %60 = vector.extract_strided_slice %11 {offsets = [1, 0, 0], sizes = [1, 4, 128], strides = [1, 1, 1]} : vector<2x4x128xf32> to vector<1x4x128xf32>
    %61 = vector.shape_cast %60 : vector<1x4x128xf32> to vector<4x128xf32>
    %c4_32 = arith.constant 4 : index
    %c0_33 = arith.constant 0 : index
    %62 = vector.load %arg8[%c4_32, %c0_33] : memref<12x128xf32, #tpu.memory_space<vmem>>, vector<4x128xf32>
    tpu.vector_store %arg8[%c4_32, %c0_33], %61 {strides = array<i32>} : memref<12x128xf32, #tpu.memory_space<vmem>>, vector<4x128xf32>,
    %63 = vector.extract_strided_slice %11 {offsets = [1, 0, 2], sizes = [1, 4, 126], strides = [1, 1, 1]} : vector<2x4x128xf32> to vector<1x4x126xf32>
    %64 = vector.shape_cast %63 : vector<1x4x126xf32> to vector<4x126xf32>
    %c8_34 = arith.constant 8 : index
    %c0_35 = arith.constant 0 : index
    %65 = vector.load %arg8[%c8_34, %c0_35] : memref<12x128xf32, #tpu.memory_space<vmem>>, vector<4x126xf32>
    tpu.vector_store %arg8[%c8_34, %c0_35], %64 {strides = array<i32>} : memref<12x128xf32, #tpu.memory_space<vmem>>, vector<4x126xf32>,
    %66 = vector.extract_strided_slice %29 {offsets = [1, 0, 0], sizes = [1, 4, 2], strides = [1, 1, 1]} : vector<2x4x128xf32> to vector<1x4x2xf32>
    %67 = vector.shape_cast %66 : vector<1x4x2xf32> to vector<4x2xf32>
    %c8_36 = arith.constant 8 : index
    %c126_37 = arith.constant 126 : index
    %68 = vector.load %arg8[%c8_36, %c126_37] : memref<12x128xf32, #tpu.memory_space<vmem>>, vector<4x2xf32>
    tpu.vector_store %arg8[%c8_36, %c126_37], %67 {strides = array<i32>} : memref<12x128xf32, #tpu.memory_space<vmem>>, vector<4x2xf32>,
    %c0_38 = arith.constant 0 : index
    %c0_39 = arith.constant 0 : index
    %69 = vector.load %arg8[%c0_38, %c0_39] : memref<12x128xf32, #tpu.memory_space<vmem>>, vector<12x128xf32>
    %cst_40 = arith.constant dense<0.000000e+00> : vector<8x128xf32>
    %70 = tpu.matmul %30, %69, %cst_40 {dimension_numbers = #tpu.dot_dimension_numbers<[1], [0], [0], [1], [0, 0, 1, 1], [], []>} : vector<8x12xf32>, vector<12x128xf32>, vector<8x128xf32> -> vector<8x128xf32>
    %71 = vector.broadcast %31 : vector<8x1xf32> to vector<8x128xf32>
    %72 = arith.addf %70, %71 : vector<8x128xf32>
    %c1 = arith.constant 1 : index
    %c0_41 = arith.constant 0 : index
    %c0_42 = arith.constant 0 : index
    %73 = vector.load %arg7[%c1, %c0_41, %c0_42] : memref<2x8x128xf32, #tpu.memory_space<vmem>>, vector<1x8x128xf32>
    %74 = vector.shape_cast %73 : vector<1x8x128xf32> to vector<8x128xf32>
    %75 = vector.shape_cast %72 : vector<8x128xf32> to vector<1x8x128xf32>
    tpu.vector_store %arg7[%c1, %c0_41, %c0_42], %75 {strides = array<i32>} : memref<2x8x128xf32, #tpu.memory_space<vmem>>, vector<1x8x128xf32>,
    return
  }
  func.func @transform_0(%arg0: i32, %arg1: i32) -> (i32, i32, i32) {
    %c1_i32 = arith.constant 1 : i32
    %0 = arith.muli %arg1, %c1_i32 : i32
    %c1_i32_0 = arith.constant 1 : i32
    %1 = arith.subi %0, %c1_i32_0 : i32
    %c0_i32 = arith.constant 0 : i32
    %2 = arith.maxsi %1, %c0_i32 : i32
    %c0_i32_1 = arith.constant 0 : i32
    %c0_i32_2 = arith.constant 0 : i32
    return %arg0, %c0_i32_1, %2 : i32, i32, i32
  }
  func.func @transform_1(%arg0: i32, %arg1: i32) -> (i32, i32, i32) {
    %c0_i32 = arith.constant 0 : i32
    %c0_i32_0 = arith.constant 0 : i32
    return %arg0, %c0_i32, %arg1 : i32, i32, i32
  }
  func.func @transform_2(%arg0: i32, %arg1: i32) -> (i32, i32, i32) {
    %c1_i32 = arith.constant 1 : i32
    %0 = arith.addi %arg1, %c1_i32 : i32
    %c1_i32_0 = arith.constant 1 : i32
    %1 = arith.muli %0, %c1_i32_0 : i32
    %c0_i32 = arith.constant 0 : i32
    %2 = arith.minsi %1, %c0_i32 : i32
    %c0_i32_1 = arith.constant 0 : i32
    %c0_i32_2 = arith.constant 0 : i32
    return %arg0, %c0_i32_1, %2 : i32, i32, i32
  }
  func.func @transform_3(%arg0: i32, %arg1: i32) -> (i32, i32) {
    %c0_i32 = arith.constant 0 : i32
    %c0_i32_0 = arith.constant 0 : i32
    %c0_i32_1 = arith.constant 0 : i32
    return %c0_i32, %c0_i32_0 : i32, i32
  }
  func.func @transform_4(%arg0: i32, %arg1: i32) -> (i32, i32) {
    %c0_i32 = arith.constant 0 : i32
    %c0_i32_0 = arith.constant 0 : i32
    %c0_i32_1 = arith.constant 0 : i32
    return %c0_i32, %c0_i32_0 : i32, i32
  }
  func.func @transform_5(%arg0: i32, %arg1: i32) -> (i32, i32, i32) {
    %c0_i32 = arith.constant 0 : i32
    %c0_i32_0 = arith.constant 0 : i32
    return %arg0, %c0_i32, %arg1 : i32, i32, i32
  }
}

</mosaic_0001>

<bundles_post_ra>
// kernel: tpu_custom_call.1
= control target key start
LH: loop header
LB: loop body
LE: loop exit
PB: predicated region body
PF: predicated region fallthrough
CT: control target
= control target key end

     0   :  { %10 = vsyncpa [#allocation4], 0  ;;  %s452_s0 = inlined_call_operand.vmem [shape: f32[2,4,16], index: 0, kind: input, shape index: {}]   ;;  %s453_s1 = inlined_call_operand.hbm [shape: f32[2,4,16], index: 1, kind: input, shape index: {}]   ;;  %s454_s2 = inlined_call_operand.hbm [shape: f32[2,4,16], index: 2, kind: input, shape index: {}]   ;;  %s455_s3 = inlined_call_operand.hbm [shape: f32[8,12], index: 3, kind: input, shape index: {}]   ;;  %s456_s4 = inlined_call_operand.vmem [shape: f32[8,1], index: 4, kind: input, shape index: {}]   ;;  %s457_s5 = inlined_call_operand.hbm [shape: f32[2,8,16], index: 5, kind: output, shape index: {}]  }
   0x1   :  { %11 = vsyncpa [#allocation7], 0 }
   0x2   :  { %12 = vsyncpa [#allocation5], 0  ;;  %s47_s19 = sshll.u32 %s454_s2, 4  ;;  %s389_s20 = smov [#allocation6]   ;;  %s48_s19 = int_to_ptr.hbm [resolvable:$true] %s47_s19 }
   0x3   :  { %s49_s21 = sshll.u32 %s389_s20, 4  ;;  %s29_s24 = sshll.u32 %s453_s1, 4  ;;  %s50_s21 = int_to_ptr.vmem [resolvable:$true] %s49_s21  ;;  %s30_s24 = int_to_ptr.hbm [resolvable:$true] %s29_s24 }
   0x4   :  { %s390_s25 = smov 64   ;;  %s391_s26 = smov 4  }
   0x5   :  { %55 = dma.hbm_to_vmem [thread:$0]  %s48_s19, 128, %s50_s21, [#allocation7], %s390_s25, %s390_s25, %s391_s26  }
   0x6   :  { %s392_s27 = smov [#allocation3]   ;;  %s61_s6 = sshll.u32 %s455_s3, 4  ;;  %s62_s6 = int_to_ptr.hbm [resolvable:$true] %s61_s6 }
   0x7   :  { %s31_s28 = sshll.u32 %s392_s27, 4  ;;  %s393_s2 = smov [#allocation8]   ;;  %s32_s28 = int_to_ptr.vmem [resolvable:$true] %s31_s28 }
   0x8   :  { %37 = dma.hbm_to_vmem [thread:$0]  %s30_s24, 128, %s32_s28, [#allocation4], %s390_s25, %s390_s25, %s391_s26  }
   0x9   :  { %s63_s7 = sshll.u32 %s393_s2, 4  ;;  %s64_s7 = int_to_ptr.vmem [resolvable:$true] %s63_s7 }
   0xa   :  { %66 = dma.hbm_to_vmem [thread:$0]  %s62_s6, 128, %s64_s7, [#allocation7]  }
   0xb   :  { %383 = dma.done.wait [#allocation4], 128  }
   0xc   :  { %384 = vsyncadd [#allocation4], 4294967168 }
   0xd   :  { %385 = dma.done.wait [#allocation7], 256  }
   0xe   :  { %386 = vsyncadd [#allocation7], 4294967040  ;;  %v104_v0 = vlaneseq  ;;  %v394_v1 = vmov 0.0   ;;  %s395_s1 = smov 2   ;;  %v101_v3 = vld [vmem:[#allocation3] sm:$0xf] }
   0xf   :  { %135 = vrot.lane.b32.xlu1 %v394_v1, %s395_s1  ;;  %v102_v4 = vld [vmem:[#allocation3 + $0x4] sm:$0xf]  ;;  %s396_s3 = smov 126   ;;  %vm138_vm1 = vcmask 11264   ;;  %v133_v8 = vld [vmem:[%s456_s4] sm:$0xff]  ;;  %vm150_vm2 = vcmask 1027072  }
  0x10   :  { %v105_v2 = vand.u32 127, %v104_v0  ;;  %v397_v9 = vmov 0   ;;  %vm144_vm3 = vcmask 1043472   ;;  %vm156_vm4 = vcmask 1044464   ;;  %v132_v19 = vld [vmem:[#allocation8] sm:$0xff]  ;;  %s398_s4 = smov [#allocation9]  }
  0x11   :  { %285 = vset.pattern.permute.xlu2 %v397_v9  ;;  %286 = vset.pattern.permute.xlu0 %v397_v9  ;;  %vm169_vm5 = vcmask 1043456   ;;  %vm165_vm6 = vcmask 97280   ;;  %s245_s10 = sshll.u32 %s398_s4, 4  ;;  %s247_s13 = sshll.u32 %s457_s5, 4  ;;  %s246_s10 = int_to_ptr.vmem [resolvable:$true] %s245_s10  ;;  %s248_s13 = int_to_ptr.hbm [resolvable:$true] %s247_s13 }
  0x12   :  { %vm108_vm0 = vcmp.lt.s32.totalorder %v105_v2, 16  ;;  %s399_s14 = smov 128   ;;  %s400_s15 = smov 8  }
  0x13   :  { %v111_v5 = vsel %vm108_vm0, %v101_v3, 0.0  ;;  %v112_v6 = vsel %vm108_vm0, %v102_v4, 0.0 }
  0x14   :  { %147 = vrot.lane.b32.xlu0 %v111_v5, %s396_s3  ;;  %146 = vst [vmem:[#allocation2 + $0x4] sm:$0xf] %v111_v5  ;;  %205 = vrot.lane.b32.xlu2 %v112_v6, %s396_s3 }
  0x17   :  { %141 = vrot.lane.b32.xlu1 %v111_v5, %s395_s1 }
  0x1c   :  { %153 = vrot.lane.b32.xlu0 %v394_v1, %s396_s3  ;;  %210 = vrot.lane.b32.xlu2 %v394_v1, %s396_s3 }
  0x1f   :  { %200 = vrot.lane.b32.xlu1 %v112_v6, %s395_s1 }
  0x24   :  { %195 = vrot.lane.b32.xlu0 %v394_v1, %s395_s1  ;;  %162 = vperm.xlu2 %285, %v133_v8  }
  0x6e   :  { %v206_v12 = vpop.permute.xlu2 %205 }
  0x76   :  { %v211_v15 = vpop.permute.xlu2 %210 }
  0x7e   :  { %v163_v22 = vpop.permute.xlu2 %162 }
  0x81   :  { %v136_v7 = vpop.permute.xlu1 %135 }
  0x82   :  { %139 = vst.msk [vmem:[#allocation2] sm:$0xf] %vm138_vm1, %v136_v7 }
  0x86   :  { %v148_v10 = vpop.permute.xlu0 %147 }
  0x87   :  { %151 = vst.msk [vmem:[#allocation2 + $0x8] sm:$0xf] %vm150_vm2, %v148_v10 }
  0x89   :  { %v142_v11 = vpop.permute.xlu1 %141 }
  0x8a   :  { %145 = vst.msk [vmem:[#allocation2] sm:$0xf] %vm144_vm3, %v142_v11 }
  0x8e   :  { %v154_v13 = vpop.permute.xlu0 %153 }
  0x8f   :  { %157 = vst.msk [vmem:[#allocation2 + $0x8] sm:$0xf] %vm156_vm4, %v154_v13 }
  0x91   :  { %v158_v14 = vld [vmem:[#allocation2] sm:$0xff]  ;;  %v201_v18 = vpop.permute.xlu1 %200 }
  0x92   :  { %204 = vst [vmem:[#allocation2 + $0x4] sm:$0xf] %v112_v6 }
  0x96   :  { %v159_v16 = vld [vmem:[#allocation2 + $0x8] sm:$0xf]  ;;  %v196_v17 = vpop.permute.xlu0 %195 }
  0x97   :  { %269 = vmatpush.msk.msra.mxu0 %vm169_vm5, %v159_v16  ;;  %208 = vst.msk [vmem:[#allocation2 + $0x8] sm:$0xf] %vm150_vm2, %v206_v12 }
  0x98   :  { %213 = vst.msk [vmem:[#allocation2 + $0x8] sm:$0xf] %vm156_vm4, %v211_v15 }
  0x99   :  { %188 = vmatpush.msra.mxu0 %v158_v14  ;;  %198 = vst.msk [vmem:[#allocation2] sm:$0xf] %vm138_vm1, %v196_v17 }
  0x9a   :  { %203 = vst.msk [vmem:[#allocation2] sm:$0xf] %vm144_vm3, %v201_v18  ;;  %270 = vmatmul.msk.f32.vlgmr.msra.gmra.mxu0 %vm165_vm6, %v132_v19 }
  0x9f   :  { %v215_v20 = vld [vmem:[#allocation2 + $0x8] sm:$0xf] }
  0xa0   :  { %271 = vmatpush.msk.msra.mxu1 %vm169_vm5, %v215_v20 }
  0xa1   :  { %v214_v21 = vld [vmem:[#allocation2] sm:$0xff] }
  0xa2   :  { %234 = vmatpush.msra.mxu1 %v214_v21 }
  0xa3   :  { %272 = vmatmul.msk.f32.vlgmr.msra.gmra.mxu1 %vm165_vm6, %v132_v19 }
 0x117   :  { %v190_v23 = vpop.f32.mrf.mxu0 }
 0x118   :  { %v191_v24 = vadd.f32 %v190_v23, %v163_v22 }
 0x11a   :  { %193 = vst [vmem:[#allocation9] sm:$0xff] %v191_v24 }
 0x120   :  { %v236_v25 = vpop.f32.mrf.mxu1 }
 0x121   :  { %v237_v26 = vadd.f32 %v236_v25, %v163_v22 }
 0x123   :  { %240 = vst [vmem:[#allocation9 + $0x8] sm:$0xff] %v237_v26 }
 0x124   :  { %253 = dma.vmem_to_hbm [thread:$0]  %s246_s10, 256, %s248_s13, [#allocation5], %s399_s14, %s399_s14, %s400_s15  }
 0x125   :  { %387 = dma.done.wait [#allocation5], 256  }
 0x126   :  { %388 = vsyncadd [#allocation5], 4294967040 }
 0x127   :  { %258 = vsyncpa [#allocation4], 1 }
 0x128   :  { %259 = vsyncpa [#allocation7], 1 }
 0x129   :  { %260 = vsyncpa [#allocation5], 1 }

</bundles_post_ra>
